<compile_context>
chip_gen: v7x
topology: tpu7x:2x2x1
jax: 0.10.0
libtpu: 0.0.40
codegen_flags: <defaults>
</compile_context>

<pallas_src>
import jax
import jax.numpy as jnp
from jax.experimental import pallas as pl
from jax.experimental.pallas import tpu as pltpu

_LANE = 128


# --------------------------------------------------------------------------
# Hardware queries (safe fallbacks so this runs on any generation).
# --------------------------------------------------------------------------
def _vmem_capacity_bytes():
    try:
        cap = int(pltpu.get_tpu_info().vmem_capacity_bytes)
        if cap > 0:
            return cap
    except Exception:
        pass
    return 64 << 20  # v7x-sized conservative fallback (safe everywhere)


def _cores_per_chip():
    """2 for dual-TensorCore chips (v4 / v5p / v7x), else 1."""
    try:
        kind = jax.devices()[0].device_kind.lower()
    except Exception:
        return 1
    return 2 if any(tag in kind for tag in ("v4", "v5p", "v7")) else 1


# --------------------------------------------------------------------------
# Kernels
# --------------------------------------------------------------------------
def _single_pass_kernel(inv_hw, apply_in_f32, apply_dtype):
    def kernel(t1_ref, t2_ref, w1t_ref, w2a_ref, w2b_ref, v_ref):
        # ---- global average pool, accumulated in f32 --------------------
        u = t1_ref[...].astype(jnp.float32) + t2_ref[...].astype(jnp.float32)
        s = jnp.sum(u, axis=-1) * inv_hw                       # (Bt, C)

        # ---- tiny FC path: plain 2-D MXU dots on pre-transposed f32 ----
        z = jnp.maximum(
            jnp.dot(s, w1t_ref[...], preferred_element_type=jnp.float32), 0.0)
        a0 = jnp.dot(z, w2a_ref[...], preferred_element_type=jnp.float32)
        a1 = jnp.dot(z, w2b_ref[...], preferred_element_type=jnp.float32)
        # softmax over the M=2 branch axis == sigmoid of the logit diff
        g = jax.nn.sigmoid(a0 - a1)[:, :, None]                # (Bt, C, 1)

        # ---- apply: V = t2 + g*(t1 - t2); re-read refs so no full-block
        # f32 copies of the inputs stay live across pool/FC ---------------
        t1b = t1_ref[...]
        t2b = t2_ref[...]
        if apply_in_f32:
            v = (t2b.astype(jnp.float32)
                 + g * (t1b.astype(jnp.float32) - t2b.astype(jnp.float32)))
        else:  # bf16 apply on bf16 inputs (native bf16 VALU on v6e/v7x)
            v = t2b + g.astype(apply_dtype) * (t1b - t2b)
        v_ref[...] = v.astype(v_ref.dtype)

    return kernel


def _pool_kernel(hw, ht):
    def kernel(t1_ref, t2_ref, s_ref):
        j = pl.program_id(1)

        @pl.when(j == 0)
        def _():
            s_ref[...] = jnp.zeros_like(s_ref)

        u = t1_ref[...].astype(jnp.float32) + t2_ref[...].astype(jnp.float32)
        if hw % ht != 0:  # mask the ragged tail tile (OOB lanes are stale)
            lane = jax.lax.broadcasted_iota(jnp.int32, u.shape, 2)
            u = jnp.where(j * ht + lane < hw, u, 0.0)
        s_ref[...] += jnp.sum(u, axis=-1, keepdims=True)

    return kernel


def _apply_kernel(apply_in_f32, apply_dtype):
    def kernel(t1_ref, t2_ref, g_ref, v_ref):
        g = g_ref[...]                                         # (Bt, C, 1) f32
        t1b = t1_ref[...]
        t2b = t2_ref[...]
        if apply_in_f32:
            v = (t2b.astype(jnp.float32)
                 + g * (t1b.astype(jnp.float32) - t2b.astype(jnp.float32)))
        else:
            v = t2b + g.astype(apply_dtype) * (t1b - t2b)
        v_ref[...] = v.astype(v_ref.dtype)

    return kernel


# --------------------------------------------------------------------------
# Wrapper
# --------------------------------------------------------------------------
def skconv_forward(t1, t2, w1, w2, *, two_phase=None, vmem_budget_bytes=None):
    """SKConv forward (module default M=2).

    t1, t2 : (B, C, H, W) feature maps (f32 or bf16)
    w1     : (d, C)    fc1 1x1-conv weight
    w2     : (2*C, d)  fc2 1x1-conv weight
    """
    B, C, H, W = t1.shape
    HW = H * W
    d = w1.shape[0]
    if w2.shape[0] != 2 * C:
        raise ValueError("kernel specializes the module default M=2")

    dtype = t1.dtype
    itemsize = jnp.dtype(dtype).itemsize
    apply_in_f32 = jnp.dtype(dtype) != jnp.dtype(jnp.bfloat16)
    inv_hw = 1.0 / float(HW)

    # Free metadata reshape (contiguous last dims) - no extra HBM pass.
    t1f = t1.reshape(B, C, HW)
    t2f = t2.reshape(B, C, HW)

    # Pre-transposed, pre-cast weights (no in-kernel transpose / broadcast).
    w1t = w1.T.astype(jnp.float32)             # (C, d)
    w2a = w2[:C, :].T.astype(jnp.float32)      # (d, C)  branch-0 logits
    w2b = w2[C:, :].T.astype(jnp.float32)      # (d, C)  branch-1 logits
    w_bytes = (w1t.size + w2a.size + w2b.size) * 4

    capacity = _vmem_capacity_bytes()
    budget = (int(capacity * 0.8) if vmem_budget_bytes is None
              else int(vmem_budget_bytes))
    cores = _cores_per_chip()

    row_bytes = C * HW * itemsize              # one batch row, input dtype
    row_f32 = C * HW * 4
    # single-pass per-batch VMEM: 3 streams x 2 buffers + ~3 f32 temporaries
    per_batch_need = 6 * row_bytes + 3 * row_f32

    if two_phase is None:
        two_phase = per_batch_need + w_bytes + (1 << 20) > budget

    if not two_phase:
        # ---------------- single-pass path -------------------------------
        bt = max(1, min(B, budget // max(per_batch_need, 1)))
        # streamed buffers beyond ~8 MB buy no extra HBM bandwidth
        bt = min(bt, max(1, (8 << 20) // max(row_bytes, 1)))
        if cores > 1 and B > 1:
            bt = min(bt, max(1, B // 2))       # >= 2 steps: keep both TCs busy
        while B % bt:
            bt -= 1

        need = 6 * bt * row_bytes + 3 * bt * row_f32 + 4 * w_bytes + (2 << 20)
        vmem_limit = int(min(max(need, 32 << 20), capacity))

        out = pl.pallas_call(
            _single_pass_kernel(inv_hw, apply_in_f32, dtype),
            out_shape=jax.ShapeDtypeStruct((B, C, HW), dtype),
            grid_spec=pltpu.PrefetchScalarGridSpec(
                num_scalar_prefetch=0,
                grid=(B // bt,),
                in_specs=[
                    pl.BlockSpec((bt, C, HW), lambda i: (i, 0, 0)),
                    pl.BlockSpec((bt, C, HW), lambda i: (i, 0, 0)),
                    pl.BlockSpec((C, d), lambda i: (0, 0)),
                    pl.BlockSpec((d, C), lambda i: (0, 0)),
                    pl.BlockSpec((d, C), lambda i: (0, 0)),
                ],
                out_specs=pl.BlockSpec((bt, C, HW), lambda i: (i, 0, 0)),
            ),
            compiler_params=pltpu.CompilerParams(
                dimension_semantics=("parallel",),
                vmem_limit_bytes=vmem_limit,
            ),
        )(t1f, t2f, w1t, w2a, w2b)
        return out.reshape(B, C, H, W)

    # ---------------- two-phase path (huge C*HW rows) ---------------------
    bt = 1
    # spatial tile sized so the apply pass (the larger one) fits the budget:
    # 3 streams x 2 buffers x C*ht*itemsize + ~3 f32 temporaries of C*ht.
    ht = budget // max(C * (6 * itemsize + 12), 1)
    ht = max(_LANE, (ht // _LANE) * _LANE)
    if ht >= HW:
        ht = HW                                # full extent is always legal
    n_sp = pl.cdiv(HW, ht)

    need = 6 * C * ht * itemsize + 3 * C * ht * 4 + w_bytes + (2 << 20)
    vmem_limit = int(min(max(need, 32 << 20), capacity))

    pooled = pl.pallas_call(
        _pool_kernel(HW, ht),
        out_shape=jax.ShapeDtypeStruct((B, C, 1), jnp.float32),
        grid_spec=pltpu.PrefetchScalarGridSpec(
            num_scalar_prefetch=0,
            grid=(B // bt, n_sp),
            in_specs=[
                pl.BlockSpec((bt, C, ht), lambda i, j: (i, 0, j)),
                pl.BlockSpec((bt, C, ht), lambda i, j: (i, 0, j)),
            ],
            out_specs=pl.BlockSpec((bt, C, 1), lambda i, j: (i, 0, 0)),
        ),
        compiler_params=pltpu.CompilerParams(
            dimension_semantics=("parallel", "arbitrary"),
            vmem_limit_bytes=vmem_limit,
        ),
    )(t1f, t2f)

    # Tiny gate (B x C / B x d): plain XLA, negligible next to the HBM passes.
    s = pooled[:, :, 0] * inv_hw
    z = jnp.maximum(s @ w1t, 0.0)
    g = jax.nn.sigmoid(z @ w2a - z @ w2b)[:, :, None]          # (B, C, 1) f32

    out = pl.pallas_call(
        _apply_kernel(apply_in_f32, dtype),
        out_shape=jax.ShapeDtypeStruct((B, C, HW), dtype),
        grid_spec=pltpu.PrefetchScalarGridSpec(
            num_scalar_prefetch=0,
            grid=(B // bt, n_sp),
            in_specs=[
                pl.BlockSpec((bt, C, ht), lambda i, j: (i, 0, j)),
                pl.BlockSpec((bt, C, ht), lambda i, j: (i, 0, j)),
                pl.BlockSpec((bt, C, 1), lambda i, j: (i, 0, 0)),
            ],
            out_specs=pl.BlockSpec((bt, C, ht), lambda i, j: (i, 0, j)),
        ),
        compiler_params=pltpu.CompilerParams(
            dimension_semantics=("parallel", "parallel"),
            vmem_limit_bytes=vmem_limit,
        ),
    )(t1f, t2f, g)
    return out.reshape(B, C, H, W)


# --------------------------------------------------------------------------
# Pure-JAX reference (matches PyTorch SKConv.forward with M=2)
# --------------------------------------------------------------------------
def skconv_ref(t1, t2, w1, w2, M=2):
    B, C, H, W = t1.shape
    U = t1 + t2
    s = U.mean(axis=(2, 3))                    # (B, C)
    z = jax.nn.relu(s @ w1.T)                  # (B, d)
    a = (z @ w2.T).reshape(B, M, C)
    a = jax.nn.softmax(a, axis=1)
    g0 = a[:, 0, :][:, :, None, None]
    g1 = a[:, 1, :][:, :, None, None]
    return t1 * g0 + t2 * g1


if __name__ == "__main__":
    key = jax.random.PRNGKey(0)
    M, r, L = 2, 16, 32

    # Config 2 has H*W = 144 (not a multiple of 128) to exercise the masked
    # lane-tail path and B=4 for the batched (Bt > 1) single-pass path.
    configs = [(2, 4, 16, 16), (4, 4, 12, 12)]
    for (B, C, H, W) in configs:
        key, k1, k2, k3, k4 = jax.random.split(key, 5)
        d = max(C // r, L)

        t1 = jax.random.normal(k1, (B, C, H, W), jnp.float32)
        t2 = jax.random.normal(k2, (B, C, H, W), jnp.float32)
        w1 = jax.random.normal(k3, (d, C), jnp.float32) * 0.1     # (d, C)
        w2 = jax.random.normal(k4, (M * C, d), jnp.float32) * 0.1  # (2C, d)

        v_ref = skconv_ref(t1, t2, w1, w2, M=M)

        # Default (single-pass) path.
        v = skconv_forward(t1, t2, w1, w2)
        jax.block_until_ready(v)
        if not jnp.allclose(v, v_ref, atol=1e-4, rtol=1e-4):
            err = float(jnp.max(jnp.abs(v - v_ref)))
            raise AssertionError(
                f"single-pass SKConv mismatch for {(B, C, H, W)}: "
                f"max|diff|={err}")

        # Forced two-phase path with a tiny budget: exercises spatial tiling,
        # cross-tile pool accumulation and (for HW=144) the tail mask.
        v2 = skconv_forward(t1, t2, w1, w2, two_phase=True,
                            vmem_budget_bytes=32 << 10)
        jax.block_until_ready(v2)
        if not jnp.allclose(v2, v_ref, atol=1e-4, rtol=1e-4):
            err = float(jnp.max(jnp.abs(v2 - v_ref)))
            raise AssertionError(
                f"two-phase SKConv mismatch for {(B, C, H, W)}: "
                f"max|diff|={err}")

    print("KERNEL_OK")
</pallas_src>

<mosaic_0001>
module attributes {stable_mosaic.version = 11 : i64} {
  func.func @kernel(%arg0: i32, %arg1: memref<2x4x256xf32, #tpu.memory_space<vmem>>, %arg2: memref<2x4x256xf32, #tpu.memory_space<vmem>>, %arg3: memref<4x32xf32, #tpu.memory_space<vmem>>, %arg4: memref<32x4xf32, #tpu.memory_space<vmem>>, %arg5: memref<32x4xf32, #tpu.memory_space<vmem>>, %arg6: memref<2x4x256xf32, #tpu.memory_space<vmem>>) attributes {dimension_semantics = [#tpu.dimension_semantics<parallel>], iteration_bounds = array<i64: 1>, scalar_prefetch = 0 : i64, scratch_operands = 0 : i64, tpu.core_type = #tpu.core_type<tc>, window_params = [{transform_indices = @transform_0, window_bounds = array<i64: 2, 4, 256>}, {transform_indices = @transform_1, window_bounds = array<i64: 2, 4, 256>}, {pipeline_mode = #tpu.pipeline_mode<synchronous>, transform_indices = @transform_2, window_bounds = array<i64: 4, 32>}, {pipeline_mode = #tpu.pipeline_mode<synchronous>, transform_indices = @transform_3, window_bounds = array<i64: 32, 4>}, {pipeline_mode = #tpu.pipeline_mode<synchronous>, transform_indices = @transform_4, window_bounds = array<i64: 32, 4>}, {transform_indices = @transform_5, window_bounds = array<i64: 2, 4, 256>}]} {
    %c0 = arith.constant 0 : index
    %c0_0 = arith.constant 0 : index
    %c0_1 = arith.constant 0 : index
    %0 = vector.load %arg1[%c0, %c0_0, %c0_1] : memref<2x4x256xf32, #tpu.memory_space<vmem>>, vector<2x4x256xf32>
    %c0_2 = arith.constant 0 : index
    %c0_3 = arith.constant 0 : index
    %c0_4 = arith.constant 0 : index
    %1 = vector.load %arg2[%c0_2, %c0_3, %c0_4] : memref<2x4x256xf32, #tpu.memory_space<vmem>>, vector<2x4x256xf32>
    %2 = arith.addf %0, %1 : vector<2x4x256xf32>
    %cst = arith.constant dense<0.000000e+00> : vector<2x4xf32>
    %3 = vector.multi_reduction <add>, %2, %cst [2] : vector<2x4x256xf32> to vector<2x4xf32>
    %cst_5 = arith.constant 3.906250e-03 : f32
    %4 = vector.broadcast %cst_5 : f32 to vector<2x4xf32>
    %5 = arith.mulf %3, %4 : vector<2x4xf32>
    %c0_6 = arith.constant 0 : index
    %c0_7 = arith.constant 0 : index
    %6 = vector.load %arg3[%c0_6, %c0_7] : memref<4x32xf32, #tpu.memory_space<vmem>>, vector<4x32xf32>
    %cst_8 = arith.constant dense<0.000000e+00> : vector<2x32xf32>
    %7 = tpu.matmul %5, %6, %cst_8 {dimension_numbers = #tpu.dot_dimension_numbers<[1], [0], [0], [1], [0, 0, 1, 1], [], []>} : vector<2x4xf32>, vector<4x32xf32>, vector<2x32xf32> -> vector<2x32xf32>
    %cst_9 = arith.constant 0.000000e+00 : f32
    %8 = vector.broadcast %cst_9 : f32 to vector<2x32xf32>
    %9 = arith.maximumf %7, %8 : vector<2x32xf32>
    %c0_10 = arith.constant 0 : index
    %c0_11 = arith.constant 0 : index
    %10 = vector.load %arg4[%c0_10, %c0_11] : memref<32x4xf32, #tpu.memory_space<vmem>>, vector<32x4xf32>
    %cst_12 = arith.constant dense<0.000000e+00> : vector<2x4xf32>
    %11 = tpu.matmul %9, %10, %cst_12 {dimension_numbers = #tpu.dot_dimension_numbers<[1], [0], [0], [1], [0, 0, 1, 1], [], []>} : vector<2x32xf32>, vector<32x4xf32>, vector<2x4xf32> -> vector<2x4xf32>
    %c0_13 = arith.constant 0 : index
    %c0_14 = arith.constant 0 : index
    %12 = vector.load %arg5[%c0_13, %c0_14] : memref<32x4xf32, #tpu.memory_space<vmem>>, vector<32x4xf32>
    %cst_15 = arith.constant dense<0.000000e+00> : vector<2x4xf32>
    %13 = tpu.matmul %9, %12, %cst_15 {dimension_numbers = #tpu.dot_dimension_numbers<[1], [0], [0], [1], [0, 0, 1, 1], [], []>} : vector<2x32xf32>, vector<32x4xf32>, vector<2x4xf32> -> vector<2x4xf32>
    %14 = arith.subf %11, %13 : vector<2x4xf32>
    %15 = arith.negf %14 : vector<2x4xf32>
    %16 = math.exp %15 : vector<2x4xf32>
    %cst_16 = arith.constant 1.000000e+00 : f32
    %17 = vector.broadcast %cst_16 : f32 to vector<2x4xf32>
    %18 = arith.addf %17, %16 : vector<2x4xf32>
    %19 = arith.divf %17, %18 : vector<2x4xf32>
    %20 = vector.shape_cast %19 : vector<2x4xf32> to vector<2x4x1xf32>
    %c0_17 = arith.constant 0 : index
    %c0_18 = arith.constant 0 : index
    %c0_19 = arith.constant 0 : index
    %21 = vector.load %arg1[%c0_17, %c0_18, %c0_19] : memref<2x4x256xf32, #tpu.memory_space<vmem>>, vector<2x4x256xf32>
    %c0_20 = arith.constant 0 : index
    %c0_21 = arith.constant 0 : index
    %c0_22 = arith.constant 0 : index
    %22 = vector.load %arg2[%c0_20, %c0_21, %c0_22] : memref<2x4x256xf32, #tpu.memory_space<vmem>>, vector<2x4x256xf32>
    %23 = arith.subf %21, %22 : vector<2x4x256xf32>
    %24 = vector.broadcast %20 : vector<2x4x1xf32> to vector<2x4x256xf32>
    %25 = arith.mulf %24, %23 : vector<2x4x256xf32>
    %26 = arith.addf %22, %25 : vector<2x4x256xf32>
    %c0_23 = arith.constant 0 : index
    %c0_24 = arith.constant 0 : index
    %c0_25 = arith.constant 0 : index
    %27 = vector.load %arg6[%c0_23, %c0_24, %c0_25] : memref<2x4x256xf32, #tpu.memory_space<vmem>>, vector<2x4x256xf32>
    tpu.vector_store %arg6[%c0_23, %c0_24, %c0_25], %26 {strides = array<i32>} : memref<2x4x256xf32, #tpu.memory_space<vmem>>, vector<2x4x256xf32>,
    return
  }
  func.func @transform_0(%arg0: i32) -> (i32, i32, i32) {
    %c0_i32 = arith.constant 0 : i32
    %c0_i32_0 = arith.constant 0 : i32
    %c0_i32_1 = arith.constant 0 : i32
    return %arg0, %c0_i32, %c0_i32_0 : i32, i32, i32
  }
  func.func @transform_1(%arg0: i32) -> (i32, i32, i32) {
    %c0_i32 = arith.constant 0 : i32
    %c0_i32_0 = arith.constant 0 : i32
    %c0_i32_1 = arith.constant 0 : i32
    return %arg0, %c0_i32, %c0_i32_0 : i32, i32, i32
  }
  func.func @transform_2(%arg0: i32) -> (i32, i32) {
    %c0_i32 = arith.constant 0 : i32
    %c0_i32_0 = arith.constant 0 : i32
    %c0_i32_1 = arith.constant 0 : i32
    return %c0_i32, %c0_i32_0 : i32, i32
  }
  func.func @transform_3(%arg0: i32) -> (i32, i32) {
    %c0_i32 = arith.constant 0 : i32
    %c0_i32_0 = arith.constant 0 : i32
    %c0_i32_1 = arith.constant 0 : i32
    return %c0_i32, %c0_i32_0 : i32, i32
  }
  func.func @transform_4(%arg0: i32) -> (i32, i32) {
    %c0_i32 = arith.constant 0 : i32
    %c0_i32_0 = arith.constant 0 : i32
    %c0_i32_1 = arith.constant 0 : i32
    return %c0_i32, %c0_i32_0 : i32, i32
  }
  func.func @transform_5(%arg0: i32) -> (i32, i32, i32) {
    %c0_i32 = arith.constant 0 : i32
    %c0_i32_0 = arith.constant 0 : i32
    %c0_i32_1 = arith.constant 0 : i32
    return %arg0, %c0_i32, %c0_i32_0 : i32, i32, i32
  }
}

</mosaic_0001>

<bundles_post_ra>
// kernel: tpu_custom_call.1
= control target key start
LH: loop header
LB: loop body
LE: loop exit
PB: predicated region body
PF: predicated region fallthrough
CT: control target
= control target key end

     0   :  { %vm33_vm0 = vcmask 1043456   ;;  %s554_s0 = inlined_call_operand.vmem [shape: f32[2,4,256], index: 0, kind: input, shape index: {}]   ;;  %s555_s1 = inlined_call_operand.vmem [shape: f32[2,4,256], index: 1, kind: input, shape index: {}]   ;;  %s556_s2 = inlined_call_operand.vmem [shape: f32[4,32], index: 2, kind: input, shape index: {}]   ;;  %s557_s3 = inlined_call_operand.vmem [shape: f32[32,4], index: 3, kind: input, shape index: {}]   ;;  %s558_s4 = inlined_call_operand.vmem [shape: f32[32,4], index: 4, kind: input, shape index: {}]   ;;  %s559_s5 = inlined_call_operand.hbm [shape: f32[2,4,256], index: 5, kind: output, shape index: {}]  }
   0x1   :  { %v480_v0 = vld [vmem:[%s554_s0] sm:$0xff]  ;;  %v490_v2 = vld [vmem:[%s554_s0 + $0x8] sm:$0xff] }
   0x2   :  { %v485_v1 = vld [vmem:[%s555_s1] sm:$0xff]  ;;  %v497_v4 = vld [vmem:[%s555_s1 + $0x8] sm:$0xff] }
   0x3   :  { %v25_v3 = vadd.f32 %v485_v1, %v480_v0 }
   0x4   :  { %10 = vsyncpa [#allocation3], 0  ;;  %v26_v5 = vadd.f32 %v497_v4, %v490_v2  ;;  %v46_v14 = vld [vmem:[%s556_s2] sm:$0xf]  ;;  %v441_v15 = vmov 0.0   ;;  %vm442_vm1 = vmmov 0   ;;  %v49_v20 = vlaneseq }
   0x5   :  { %v29_v6 = vcombine.high %v25_v3, %v25_v3  ;;  %v34_v7 = vsel %vm33_vm0, %v25_v3, 0.0  ;;  %368 = vmatprep.subr.mxu0 %v441_v15  ;;  %370 = vmatprep.mubr.msk.f32.mxu0 %vm442_vm1, %v441_v15  ;;  %v138_v16 = vld [vmem:[%s557_s3] sm:$0xff]  ;;  %v139_v17 = vld [vmem:[%s557_s3 + $0x8] sm:$0xff]  ;;  %v443_v18 = vmov 0.0|0.0   ;;  %vm59_vm2 = vcmask 1041409   ;;  %v140_v34 = vld [vmem:[%s557_s3 + $0x10] sm:$0xff] }
   0x6   :  { %v30_v8 = vcombine.high %v26_v5, %v26_v5  ;;  %v39_v10 = vsel %vm33_vm0, %v26_v5, 0.0  ;;  %369 = vmatpush3.msk.msra.mxu0 %vm33_vm0, %v46_v14  ;;  %381 = vmatprep.mubr.msk.f32.mxu1 %vm442_vm1, %v441_v15  ;;  %v396_v19 = vpack.c.bf16 %v139_v17, %v138_v16  ;;  %v50_v21 = vand.u32 127, %v49_v20  ;;  %v216_v27 = vld [vmem:[%s558_s4] sm:$0xff]  ;;  %v217_v28 = vld [vmem:[%s558_s4 + $0x8] sm:$0xff]  ;;  %v141_v35 = vld [vmem:[%s557_s3 + $0x18] sm:$0xff]  ;;  %s444_s3 = smov [#allocation2]  }
   0x7   :  { %v35_v9 = vsel %vm33_vm0, %v29_v6, 0.0  ;;  %395 = vmatprep.subr.bf16.mxu1 %v443_v18  ;;  %401 = vmatprep.subr.bf16.mxu0 %v443_v18  ;;  %v52_v22 = vshrl.u32 %v49_v20, 7  ;;  %vm61_vm3 = vcmask 31744   ;;  %v402_v32 = vpack.c.bf16 %v217_v28, %v216_v27  ;;  %v218_v36 = vld [vmem:[%s558_s4 + $0x10] sm:$0xff]  ;;  %v219_v38 = vld [vmem:[%s558_s4 + $0x18] sm:$0xff]  ;;  %s340_s4 = sshll.u32 %s444_s3, 4  ;;  %s341_s4 = int_to_ptr.vmem [resolvable:$true] %s340_s4 }
   0x8   :  { %v36_v11 = vadd.f32 %v35_v9, %v34_v7  ;;  %v40_v12 = vsel %vm33_vm0, %v30_v8, 0.0  ;;  %397 = vmatpush3.bf16.msra.mxu1 %v396_v19  ;;  %v399_v37 = vpack.c.bf16 %v141_v35, %v140_v34  ;;  %v405_v39 = vpack.c.bf16 %v219_v38, %v218_v36  ;;  %s417_s16 = scalar_lea.vmem %s341_s4, 256  ;;  %p422_p1 = scmp.lt.s32.totalorder %s341_s4, %s341_s4 }
   0x9   :  { %v41_v13 = vadd.f32 %v40_v12, %v39_v10  ;;  %398 = vmatprep.subr.bf16.mxu1 %v443_v18  ;;  %v53_v24 = vsub.s32 %v50_v21, %v52_v22  ;;  %vm142_vm4 = vcmask 261120   ;;  %v299_v51 = vsub.s32 0, %v52_v22  ;;  %p418_p0 = scmp.ne.s32.totalorder %s341_s4, %s417_s16  ;;  %p423_p2 = scmp.lt.s32.totalorder %s417_s16, %s417_s16 }
   0xa   :  { %37 = vadd.xlane.f32.xlu0 %v36_v11  ;;  %v306_v54 = vsub.s32 1, %v52_v22  ;;  %v311_v56 = vsub.f32 %v480_v0, %v485_v1  ;;  %v312_v58 = vsub.f32 %v490_v2, %v497_v4 }
   0xb   :  { %p424_p3 = por %p423_p2, %p422_p1 }
   0xc   :  { %400 = vmatpush3.bf16.msra.mxu1 %v399_v37  ;;  %v315_v57 = vcombine.high %v311_v56, %v311_v56  ;;  %v316_v62 = vcombine.high %v312_v58, %v312_v58 }
   0xd   :  { %p425_p4 = pnand %p424_p3, %p418_p0 }
   0xe   :  { %42 = vadd.xlane.f32.xlu0 %v41_v13 }
  0x97   :  { %v38_v23 = vpop.xlane.xlu0 %37 }
  0x98   :  { %v44_v25 = vmul.f32 0.00390625, %v38_v23 }
  0x9a   :  { %v54_v30 = vrot.slane %v44_v25, %v53_v24 }
  0x9b   :  { %v43_v26 = vpop.xlane.xlu0 %42 }
  0x9c   :  { %v45_v29 = vmul.f32 0.00390625, %v43_v26 }
  0x9e   :  { %v58_v31 = vrot.slane %v45_v29, %v53_v24 }
  0xa0   :  { %v60_v33 = vsel %vm59_vm2, %v58_v31, %v54_v30 }
  0xa1   :  { %371 = vmatmul.mubr.msk.f32.vlgmr.msra.gmra.mrb[0].mxu0 %vm61_vm3, %v60_v33 }
  0xa2   :  { %403 = vmatpush3.bf16.msra.mxu0 %v402_v32  ;;  %392 = vmatprep.mubr.msk.f32.mxu0 %vm442_vm1, %v441_v15 }
  0xa3   :  { %404 = vmatprep.subr.bf16.mxu0 %v443_v18 }
  0xa6   :  { %406 = vmatpush3.bf16.msra.mxu0 %v405_v39 }
 0x174   :  { %v133_v40 = vpop.f32.mrb[0].mxu0 }
 0x175   :  { %v137_v41 = vmax.f32 %v133_v40, 0.0  ;;  %v372_v42 = vpop.f32.mrb[1].mxu0 }
 0x177   :  { %382 = vmatmul.mubr.msk.f32.vlgmr.msra.gmra.mrb[0].mxu1 %vm142_vm4, %v137_v41  ;;  %393 = vmatmul.mubr.msk.f32.vlgmr.msra.gmra.mrb[2].mxu0 %vm142_vm4, %v137_v41 }
 0x24a   :  { %v212_v43 = vpop.f32.mrb[0].mxu1  ;;  %v286_v44 = vpop.f32.mrb[2].mxu0 }
 0x24b   :  { %v290_v45 = vsub.f32 %v212_v43, %v286_v44  ;;  %v383_v46 = vpop.f32.mrb[1].mxu1  ;;  %v394_v47 = vpop.f32.mrb[3].mxu0 }
 0x24d   :  { %v355_v48 = vmul.f32 -1.442695, %v290_v45 }
 0x24f   :  { %413 = vpow2.f32 %v355_v48 }
 0x259   :  { %v414_v49 = vpop.eup %413 }
 0x25a   :  { %v294_v50 = vadd.f32 1.0, %v414_v49 }
 0x25c   :  { %415 = vrcp.f32 %v294_v50 }
 0x266   :  { %v416_v52 = vpop.eup %415 }
 0x267   :  { %v300_v53 = vrot.slane %v416_v52, %v299_v51  ;;  %v307_v55 = vrot.slane %v416_v52, %v306_v54 }
 0x269   :  { %302 = vbcast.lane.b32.xlu1 %v300_v53, 256 }
 0x26d   :  { %309 = vbcast.lane.b32.xlu1 %v307_v55, 256 }
 0x2db   :  { %v303_v59 = vpop.permute.xlu1 %302 }
 0x2dc   :  { %v319_v60 = vmul.f32 %v311_v56, %v303_v59  ;;  %v320_v61 = vmul.f32 %v315_v57, %v303_v59 }
 0x2de   :  { %v327_v63 = vcombine.low %v319_v60, %v320_v61 }
 0x2df   :  { %v310_v3 = vpop.permute.xlu1 %309 }
 0x2e0   :  { %v331_v5 = vadd.f32 %v327_v63, %v485_v1  ;;  %v321_v6 = vmul.f32 %v312_v58, %v310_v3  ;;  %v322_v7 = vmul.f32 %v316_v62, %v310_v3 }
 0x2e2   :  { %333 = vst [vmem:[#allocation2] sm:$0xff] %v331_v5  ;;  %v328_v8 = vcombine.low %v321_v6, %v322_v7 }
 0x2e4   :  { %v332_v0 = vadd.f32 %v328_v8, %v497_v4 }
 0x2e6   :  { %334 = vst [vmem:[#allocation2 + $0x8] sm:$0xff] %v332_v0 }
 0x2e7   :  { %428 = shalt.err (!%p425_p4)
}
 0x2e8   :  { %s429_s19 = scalar_lea.hbm %s559_s5, 256 }
 0x2e9   :  { %p430_p5 = scmp.ne.s32.totalorder %s559_s5, %s429_s19  ;;  %p433_p6 = scmp.lt.u32.totalorder %s429_s19, %s559_s5 }
 0x2eb   :  { %p435_p7 = pnand %p433_p6, %p430_p5 }
 0x2ed   :  { %438 = shalt.err (!%p435_p7)
}
 0x2ee   :  { %s445_s24 = smov 128   ;;  %s446_s25 = smov 8  }
 0x2ef   :  { %346 = dma.vmem_to_hbm [thread:$0]  %s341_s4, 256, %s559_s5, [#allocation3], %s445_s24, %s445_s24, %s446_s25  }
 0x2f0   :  { %439 = dma.done.wait [#allocation3], 256  }
 0x2f1   :  { %440 = vsyncadd [#allocation3], 4294967040 }
 0x2f2   :  { %350 = vsyncpa [#allocation3], 1 }

</bundles_post_ra>
